<compile_context>
chip_gen: v7x
topology: tpu7x:2x2x1
jax: 0.10.0
libtpu: 0.0.40
codegen_flags: <defaults>
</compile_context>

<pallas_src>
import functools

import jax
import jax.numpy as jnp
from jax.experimental import pallas as pl
from jax.experimental.pallas import tpu as pltpu

BN_EPS = 1e-5  # PyTorch BatchNorm1d default


def _mlp_decoder_kernel(x_ref, w1_ref, b1_ref, g1_ref, be1_ref,
                        w2_ref, b2_ref, g2_ref, be2_ref,
                        o_ref, acc_ref, *, half):
    # x_ref:   (N, dim)        full input, resident across grid (constant index map)
    # w1_ref:  (dim, tile_h)   W1^T tile
    # b1/g1/be1: (1, tile_h)   Linear1 bias, BN1 gamma/beta tiles
    # w2_ref:  (tile_h, dim)   W2^T tile
    # b2/g2/be2: (1, dim)      Linear2 bias, BN2 gamma/beta
    # o_ref:   (N, dim)        output, resident across grid
    # acc_ref: (half, dim) f32 Linear2 accumulator
    k = pl.program_id(0)

    @pl.when(k == 0)
    def _():
        acc_ref[...] = jnp.zeros_like(acc_ref)

    # Second half of the batch (the "bt_x" branch); cheap VMEM load, already resident.
    bt = x_ref[pl.ds(half, half), :].astype(jnp.float32)            # (half, dim)

    # Linear(dim -> mlp_dim), one hidden-dim tile (MXU, f32 accumulation).
    h = jnp.dot(bt, w1_ref[...].astype(jnp.float32),
                preferred_element_type=jnp.float32,
                precision=jax.lax.Precision.HIGHEST)                 # (half, tile_h)
    h = h + b1_ref[...].astype(jnp.float32)

    # BatchNorm1d(mlp_dim): training-mode batch statistics over the half-batch.
    # Per-feature stats, so each hidden tile is self-contained.
    mu = jnp.mean(h, axis=0, keepdims=True)
    cen = h - mu
    var = jnp.mean(cen * cen, axis=0, keepdims=True)                 # biased variance
    h = cen * jax.lax.rsqrt(var + BN_EPS)
    h = h * g1_ref[...].astype(jnp.float32) + be1_ref[...].astype(jnp.float32)

    # ReLU.
    h = jnp.maximum(h, 0.0)

    # Linear(mlp_dim -> dim): accumulate partial products over hidden-dim tiles.
    acc_ref[...] += jnp.dot(h, w2_ref[...].astype(jnp.float32),
                            preferred_element_type=jnp.float32,
                            precision=jax.lax.Precision.HIGHEST)     # (half, dim)

    @pl.when(k == pl.num_programs(0) - 1)
    def _():
        y = acc_ref[...] + b2_ref[...].astype(jnp.float32)
        # BatchNorm1d(dim), training-mode batch statistics.
        mu2 = jnp.mean(y, axis=0, keepdims=True)
        cen2 = y - mu2
        var2 = jnp.mean(cen2 * cen2, axis=0, keepdims=True)
        y = cen2 * jax.lax.rsqrt(var2 + BN_EPS)
        y = y * g2_ref[...].astype(jnp.float32) + be2_ref[...].astype(jnp.float32)
        # torch.cat([old_x, bt_x], dim=0): pass-through first half + MLP'd second half.
        o_ref[pl.ds(0, half), :] = x_ref[pl.ds(0, half), :]
        o_ref[pl.ds(half, half), :] = y.astype(o_ref.dtype)


def mlp_decoder(x, w1, b1, g1, be1, w2, b2, g2, be2, *,
                training=True, skip_mlp=False, tile_h=None):
    """x: (N, dim). w1: (mlp_dim, dim), w2: (dim, mlp_dim) in PyTorch layout."""
    if (not training) or skip_mlp:
        return x  # module forward is the identity in this case

    N, dim = x.shape
    assert N % 2 == 0, "batch must split into two halves"
    half = N // 2
    mlp_dim = w1.shape[0]
    assert w1.shape == (mlp_dim, dim) and w2.shape == (dim, mlp_dim)

    if tile_h is None:
        # Big hidden-dim tiles to amortize per-step overhead; weights dominate VMEM.
        tile_h = min(mlp_dim, 512)
    assert mlp_dim % tile_h == 0
    assert tile_h == mlp_dim or tile_h % 128 == 0

    # Lane-dense layouts: the contracted-into / output feature dims sit on the lane axis.
    w1t = w1.T                      # (dim, mlp_dim)
    w2t = w2.T                      # (mlp_dim, dim)
    row = lambda v: v.reshape(1, -1)

    grid = (mlp_dim // tile_h,)
    kernel = functools.partial(_mlp_decoder_kernel, half=half)

    # TODO(synk): BatchNorm running_mean/running_var updates (training side effect)
    # are not produced; only the normalized forward output is computed.
    return pl.pallas_call(
        kernel,
        out_shape=jax.ShapeDtypeStruct((N, dim), x.dtype),
        grid=grid,
        in_specs=[
            pl.BlockSpec((N, dim), lambda k: (0, 0)),        # x (resident, no re-DMA)
            pl.BlockSpec((dim, tile_h), lambda k: (0, k)),   # W1^T tile
            pl.BlockSpec((1, tile_h), lambda k: (0, k)),     # b1 tile
            pl.BlockSpec((1, tile_h), lambda k: (0, k)),     # BN1 gamma tile
            pl.BlockSpec((1, tile_h), lambda k: (0, k)),     # BN1 beta tile
            pl.BlockSpec((tile_h, dim), lambda k: (k, 0)),   # W2^T tile
            pl.BlockSpec((1, dim), lambda k: (0, 0)),        # b2
            pl.BlockSpec((1, dim), lambda k: (0, 0)),        # BN2 gamma
            pl.BlockSpec((1, dim), lambda k: (0, 0)),        # BN2 beta
        ],
        out_specs=pl.BlockSpec((N, dim), lambda k: (0, 0)),  # resident accumized output
        scratch_shapes=[pltpu.VMEM((half, dim), jnp.float32)],
        compiler_params=pltpu.CompilerParams(
            # Hidden-dim axis is a reduction into acc_ref -> must be sequential.
            dimension_semantics=("arbitrary",),
        ),
    )(x, w1t, row(b1), row(g1), row(be1), w2t, row(b2), row(g2), row(be2))


def mlp_decoder_ref(x, w1, b1, g1, be1, w2, b2, g2, be2):
    # Pure-JAX reference mirroring the PyTorch training-mode forward.
    half = x.shape[0] // 2
    old, bt = x[:half], x[half:]
    h = jnp.dot(bt, w1.T, precision=jax.lax.Precision.HIGHEST) + b1
    mu = h.mean(0, keepdims=True)
    var = ((h - mu) ** 2).mean(0, keepdims=True)
    h = (h - mu) / jnp.sqrt(var + BN_EPS) * g1 + be1
    h = jnp.maximum(h, 0.0)
    y = jnp.dot(h, w2.T, precision=jax.lax.Precision.HIGHEST) + b2
    mu2 = y.mean(0, keepdims=True)
    var2 = ((y - mu2) ** 2).mean(0, keepdims=True)
    y = (y - mu2) / jnp.sqrt(var2 + BN_EPS) * g2 + be2
    return jnp.concatenate([old, y], axis=0)


if __name__ == "__main__":
    # Small shapes consistent with the module: dim=128, mlp_dim=256, batch N=32.
    N, DIM, MLP_DIM = 32, 128, 256

    key = jax.random.PRNGKey(0)
    kx, kw1, kb1, kg1, ke1, kw2, kb2, kg2, ke2 = jax.random.split(key, 9)

    x = jax.random.normal(kx, (N, DIM), dtype=jnp.float32)

    # PyTorch Linear default init: U(-1/sqrt(in_features), 1/sqrt(in_features)).
    bound1 = 1.0 / jnp.sqrt(jnp.float32(DIM))
    bound2 = 1.0 / jnp.sqrt(jnp.float32(MLP_DIM))
    w1 = jax.random.uniform(kw1, (MLP_DIM, DIM), jnp.float32, -bound1, bound1)
    b1 = jax.random.uniform(kb1, (MLP_DIM,), jnp.float32, -bound1, bound1)
    w2 = jax.random.uniform(kw2, (DIM, MLP_DIM), jnp.float32, -bound2, bound2)
    b2 = jax.random.uniform(kb2, (DIM,), jnp.float32, -bound2, bound2)
    # BN affine params (PyTorch defaults are ones/zeros; randomized here to exercise them).
    g1 = 1.0 + 0.1 * jax.random.normal(kg1, (MLP_DIM,), jnp.float32)
    be1 = 0.1 * jax.random.normal(ke1, (MLP_DIM,), jnp.float32)
    g2 = 1.0 + 0.1 * jax.random.normal(kg2, (DIM,), jnp.float32)
    be2 = 0.1 * jax.random.normal(ke2, (DIM,), jnp.float32)

    out = mlp_decoder(x, w1, b1, g1, be1, w2, b2, g2, be2,
                      training=True, skip_mlp=False, tile_h=128)
    out = jax.block_until_ready(out)

    ref = mlp_decoder_ref(x, w1, b1, g1, be1, w2, b2, g2, be2)
    assert out.shape == (N, DIM)
    assert jnp.allclose(out, ref, atol=1e-4, rtol=1e-4), "mismatch vs reference"

    # Eval-mode / skip_mlp path: module forward is the identity.
    assert jnp.array_equal(
        mlp_decoder(x, w1, b1, g1, be1, w2, b2, g2, be2, training=False), x)

    print("KERNEL_OK")
</pallas_src>

<mosaic_0001>
module attributes {stable_mosaic.version = 11 : i64} {
  func.func @_mlp_decoder_kernel(%arg0: i32, %arg1: memref<32x128xf32, #tpu.memory_space<vmem>>, %arg2: memref<128x128xf32, #tpu.memory_space<vmem>>, %arg3: memref<1x128xf32, #tpu.memory_space<vmem>>, %arg4: memref<1x128xf32, #tpu.memory_space<vmem>>, %arg5: memref<1x128xf32, #tpu.memory_space<vmem>>, %arg6: memref<128x128xf32, #tpu.memory_space<vmem>>, %arg7: memref<1x128xf32, #tpu.memory_space<vmem>>, %arg8: memref<1x128xf32, #tpu.memory_space<vmem>>, %arg9: memref<1x128xf32, #tpu.memory_space<vmem>>, %arg10: memref<32x128xf32, #tpu.memory_space<vmem>>, %arg11: memref<16x128xf32, #tpu.memory_space<vmem>>) attributes {dimension_semantics = [#tpu.dimension_semantics<arbitrary>], iteration_bounds = array<i64: 2>, scalar_prefetch = 0 : i64, scratch_operands = 1 : i64, tpu.core_type = #tpu.core_type<tc>, window_params = [{pipeline_mode = #tpu.pipeline_mode<synchronous>, transform_indices = @transform_0, window_bounds = array<i64: 32, 128>}, {transform_indices = @transform_1, window_bounds = array<i64: 128, 128>}, {transform_indices = @transform_2, window_bounds = array<i64: 1, 128>}, {transform_indices = @transform_3, window_bounds = array<i64: 1, 128>}, {transform_indices = @transform_4, window_bounds = array<i64: 1, 128>}, {transform_indices = @transform_5, window_bounds = array<i64: 128, 128>}, {pipeline_mode = #tpu.pipeline_mode<synchronous>, transform_indices = @transform_6, window_bounds = array<i64: 1, 128>}, {pipeline_mode = #tpu.pipeline_mode<synchronous>, transform_indices = @transform_7, window_bounds = array<i64: 1, 128>}, {pipeline_mode = #tpu.pipeline_mode<synchronous>, transform_indices = @transform_8, window_bounds = array<i64: 1, 128>}, {pipeline_mode = #tpu.pipeline_mode<synchronous>, transform_indices = @transform_9, window_bounds = array<i64: 32, 128>}]} {
    %c0_i32 = arith.constant 0 : i32
    %0 = arith.cmpi eq, %arg0, %c0_i32 : i32
    %1 = arith.extui %0 : i1 to i32
    %c0_i32_0 = arith.constant 0 : i32
    %2 = arith.cmpi ne, %1, %c0_i32_0 : i32
    scf.if %2 {
      %cst_23 = arith.constant 0.000000e+00 : f32
      %41 = vector.broadcast %cst_23 : f32 to vector<16x128xf32>
      %c0_24 = arith.constant 0 : index
      %c0_25 = arith.constant 0 : index
      %42 = vector.load %arg11[%c0_24, %c0_25] : memref<16x128xf32, #tpu.memory_space<vmem>>, vector<16x128xf32>
      tpu.vector_store %arg11[%c0_24, %c0_25], %41 {strides = array<i32>} : memref<16x128xf32, #tpu.memory_space<vmem>>, vector<16x128xf32>,
    } else {
    }
    %c16 = arith.constant 16 : index
    %c0 = arith.constant 0 : index
    %3 = vector.load %arg1[%c16, %c0] : memref<32x128xf32, #tpu.memory_space<vmem>>, vector<16x128xf32>
    %c0_1 = arith.constant 0 : index
    %c0_2 = arith.constant 0 : index
    %4 = vector.load %arg2[%c0_1, %c0_2] : memref<128x128xf32, #tpu.memory_space<vmem>>, vector<128x128xf32>
    %cst = arith.constant dense<0.000000e+00> : vector<16x128xf32>
    %5 = tpu.matmul %3, %4, %cst {dimension_numbers = #tpu.dot_dimension_numbers<[1], [0], [0], [1], [0, 0, 1, 1], [], []>, precision = #tpu.contract_precision<fp32>} : vector<16x128xf32>, vector<128x128xf32>, vector<16x128xf32> -> vector<16x128xf32>
    %c0_3 = arith.constant 0 : index
    %c0_4 = arith.constant 0 : index
    %6 = vector.load %arg3[%c0_3, %c0_4] : memref<1x128xf32, #tpu.memory_space<vmem>>, vector<1x128xf32>
    %7 = vector.broadcast %6 : vector<1x128xf32> to vector<16x128xf32>
    %8 = arith.addf %5, %7 : vector<16x128xf32>
    %cst_5 = arith.constant dense<0.000000e+00> : vector<128xf32>
    %9 = vector.multi_reduction <add>, %8, %cst_5 [0] : vector<16x128xf32> to vector<128xf32>
    %10 = vector.shape_cast %9 : vector<128xf32> to vector<1x128xf32>
    %cst_6 = arith.constant 1.600000e+01 : f32
    %11 = vector.broadcast %cst_6 : f32 to vector<1x128xf32>
    %12 = arith.divf %10, %11 : vector<1x128xf32>
    %13 = vector.broadcast %12 : vector<1x128xf32> to vector<16x128xf32>
    %14 = arith.subf %8, %13 : vector<16x128xf32>
    %15 = arith.mulf %14, %14 : vector<16x128xf32>
    %cst_7 = arith.constant dense<0.000000e+00> : vector<128xf32>
    %16 = vector.multi_reduction <add>, %15, %cst_7 [0] : vector<16x128xf32> to vector<128xf32>
    %17 = vector.shape_cast %16 : vector<128xf32> to vector<1x128xf32>
    %cst_8 = arith.constant 1.600000e+01 : f32
    %18 = vector.broadcast %cst_8 : f32 to vector<1x128xf32>
    %19 = arith.divf %17, %18 : vector<1x128xf32>
    %cst_9 = arith.constant 9.99999974E-6 : f32
    %20 = vector.broadcast %cst_9 : f32 to vector<1x128xf32>
    %21 = arith.addf %19, %20 : vector<1x128xf32>
    %22 = math.rsqrt %21 : vector<1x128xf32>
    %23 = vector.broadcast %22 : vector<1x128xf32> to vector<16x128xf32>
    %24 = arith.mulf %14, %23 : vector<16x128xf32>
    %c0_10 = arith.constant 0 : index
    %c0_11 = arith.constant 0 : index
    %25 = vector.load %arg4[%c0_10, %c0_11] : memref<1x128xf32, #tpu.memory_space<vmem>>, vector<1x128xf32>
    %26 = vector.broadcast %25 : vector<1x128xf32> to vector<16x128xf32>
    %27 = arith.mulf %24, %26 : vector<16x128xf32>
    %c0_12 = arith.constant 0 : index
    %c0_13 = arith.constant 0 : index
    %28 = vector.load %arg5[%c0_12, %c0_13] : memref<1x128xf32, #tpu.memory_space<vmem>>, vector<1x128xf32>
    %29 = vector.broadcast %28 : vector<1x128xf32> to vector<16x128xf32>
    %30 = arith.addf %27, %29 : vector<16x128xf32>
    %cst_14 = arith.constant 0.000000e+00 : f32
    %31 = vector.broadcast %cst_14 : f32 to vector<16x128xf32>
    %32 = arith.maximumf %30, %31 : vector<16x128xf32>
    %c0_15 = arith.constant 0 : index
    %c0_16 = arith.constant 0 : index
    %33 = vector.load %arg11[%c0_15, %c0_16] : memref<16x128xf32, #tpu.memory_space<vmem>>, vector<16x128xf32>
    %c0_17 = arith.constant 0 : index
    %c0_18 = arith.constant 0 : index
    %34 = vector.load %arg6[%c0_17, %c0_18] : memref<128x128xf32, #tpu.memory_space<vmem>>, vector<128x128xf32>
    %cst_19 = arith.constant dense<0.000000e+00> : vector<16x128xf32>
    %35 = tpu.matmul %32, %34, %cst_19 {dimension_numbers = #tpu.dot_dimension_numbers<[1], [0], [0], [1], [0, 0, 1, 1], [], []>, precision = #tpu.contract_precision<fp32>} : vector<16x128xf32>, vector<128x128xf32>, vector<16x128xf32> -> vector<16x128xf32>
    %36 = arith.addf %33, %35 : vector<16x128xf32>
    %c0_20 = arith.constant 0 : index
    %c0_21 = arith.constant 0 : index
    %37 = vector.load %arg11[%c0_20, %c0_21] : memref<16x128xf32, #tpu.memory_space<vmem>>, vector<16x128xf32>
    tpu.vector_store %arg11[%c0_20, %c0_21], %36 {strides = array<i32>} : memref<16x128xf32, #tpu.memory_space<vmem>>, vector<16x128xf32>,
    %c1_i32 = arith.constant 1 : i32
    %38 = arith.cmpi eq, %arg0, %c1_i32 : i32
    %39 = arith.extui %38 : i1 to i32
    %c0_i32_22 = arith.constant 0 : i32
    %40 = arith.cmpi ne, %39, %c0_i32_22 : i32
    scf.if %40 {
      %c0_23 = arith.constant 0 : index
      %c0_24 = arith.constant 0 : index
      %41 = vector.load %arg11[%c0_23, %c0_24] : memref<16x128xf32, #tpu.memory_space<vmem>>, vector<16x128xf32>
      %c0_25 = arith.constant 0 : index
      %c0_26 = arith.constant 0 : index
      %42 = vector.load %arg7[%c0_25, %c0_26] : memref<1x128xf32, #tpu.memory_space<vmem>>, vector<1x128xf32>
      %43 = vector.broadcast %42 : vector<1x128xf32> to vector<16x128xf32>
      %44 = arith.addf %41, %43 : vector<16x128xf32>
      %cst_27 = arith.constant dense<0.000000e+00> : vector<128xf32>
      %45 = vector.multi_reduction <add>, %44, %cst_27 [0] : vector<16x128xf32> to vector<128xf32>
      %46 = vector.shape_cast %45 : vector<128xf32> to vector<1x128xf32>
      %cst_28 = arith.constant 1.600000e+01 : f32
      %47 = vector.broadcast %cst_28 : f32 to vector<1x128xf32>
      %48 = arith.divf %46, %47 : vector<1x128xf32>
      %49 = vector.broadcast %48 : vector<1x128xf32> to vector<16x128xf32>
      %50 = arith.subf %44, %49 : vector<16x128xf32>
      %51 = arith.mulf %50, %50 : vector<16x128xf32>
      %cst_29 = arith.constant dense<0.000000e+00> : vector<128xf32>
      %52 = vector.multi_reduction <add>, %51, %cst_29 [0] : vector<16x128xf32> to vector<128xf32>
      %53 = vector.shape_cast %52 : vector<128xf32> to vector<1x128xf32>
      %cst_30 = arith.constant 1.600000e+01 : f32
      %54 = vector.broadcast %cst_30 : f32 to vector<1x128xf32>
      %55 = arith.divf %53, %54 : vector<1x128xf32>
      %cst_31 = arith.constant 9.99999974E-6 : f32
      %56 = vector.broadcast %cst_31 : f32 to vector<1x128xf32>
      %57 = arith.addf %55, %56 : vector<1x128xf32>
      %58 = math.rsqrt %57 : vector<1x128xf32>
      %59 = vector.broadcast %58 : vector<1x128xf32> to vector<16x128xf32>
      %60 = arith.mulf %50, %59 : vector<16x128xf32>
      %c0_32 = arith.constant 0 : index
      %c0_33 = arith.constant 0 : index
      %61 = vector.load %arg8[%c0_32, %c0_33] : memref<1x128xf32, #tpu.memory_space<vmem>>, vector<1x128xf32>
      %62 = vector.broadcast %61 : vector<1x128xf32> to vector<16x128xf32>
      %63 = arith.mulf %60, %62 : vector<16x128xf32>
      %c0_34 = arith.constant 0 : index
      %c0_35 = arith.constant 0 : index
      %64 = vector.load %arg9[%c0_34, %c0_35] : memref<1x128xf32, #tpu.memory_space<vmem>>, vector<1x128xf32>
      %65 = vector.broadcast %64 : vector<1x128xf32> to vector<16x128xf32>
      %66 = arith.addf %63, %65 : vector<16x128xf32>
      %c0_36 = arith.constant 0 : index
      %c0_37 = arith.constant 0 : index
      %67 = vector.load %arg1[%c0_36, %c0_37] : memref<32x128xf32, #tpu.memory_space<vmem>>, vector<16x128xf32>
      %c0_38 = arith.constant 0 : index
      %c0_39 = arith.constant 0 : index
      %68 = vector.load %arg10[%c0_38, %c0_39] : memref<32x128xf32, #tpu.memory_space<vmem>>, vector<16x128xf32>
      tpu.vector_store %arg10[%c0_38, %c0_39], %67 {strides = array<i32>} : memref<32x128xf32, #tpu.memory_space<vmem>>, vector<16x128xf32>,
      %c16_40 = arith.constant 16 : index
      %c0_41 = arith.constant 0 : index
      %69 = vector.load %arg10[%c16_40, %c0_41] : memref<32x128xf32, #tpu.memory_space<vmem>>, vector<16x128xf32>
      tpu.vector_store %arg10[%c16_40, %c0_41], %66 {strides = array<i32>} : memref<32x128xf32, #tpu.memory_space<vmem>>, vector<16x128xf32>,
    } else {
    }
    return
  }
  func.func @transform_0(%arg0: i32) -> (i32, i32) {
    %c0_i32 = arith.constant 0 : i32
    %c0_i32_0 = arith.constant 0 : i32
    %c0_i32_1 = arith.constant 0 : i32
    return %c0_i32, %c0_i32_0 : i32, i32
  }
  func.func @transform_1(%arg0: i32) -> (i32, i32) {
    %c0_i32 = arith.constant 0 : i32
    %c0_i32_0 = arith.constant 0 : i32
    return %c0_i32, %arg0 : i32, i32
  }
  func.func @transform_2(%arg0: i32) -> (i32, i32) {
    %c0_i32 = arith.constant 0 : i32
    %c0_i32_0 = arith.constant 0 : i32
    return %c0_i32, %arg0 : i32, i32
  }
  func.func @transform_3(%arg0: i32) -> (i32, i32) {
    %c0_i32 = arith.constant 0 : i32
    %c0_i32_0 = arith.constant 0 : i32
    return %c0_i32, %arg0 : i32, i32
  }
  func.func @transform_4(%arg0: i32) -> (i32, i32) {
    %c0_i32 = arith.constant 0 : i32
    %c0_i32_0 = arith.constant 0 : i32
    return %c0_i32, %arg0 : i32, i32
  }
  func.func @transform_5(%arg0: i32) -> (i32, i32) {
    %c0_i32 = arith.constant 0 : i32
    %c0_i32_0 = arith.constant 0 : i32
    return %arg0, %c0_i32 : i32, i32
  }
  func.func @transform_6(%arg0: i32) -> (i32, i32) {
    %c0_i32 = arith.constant 0 : i32
    %c0_i32_0 = arith.constant 0 : i32
    %c0_i32_1 = arith.constant 0 : i32
    return %c0_i32, %c0_i32_0 : i32, i32
  }
  func.func @transform_7(%arg0: i32) -> (i32, i32) {
    %c0_i32 = arith.constant 0 : i32
    %c0_i32_0 = arith.constant 0 : i32
    %c0_i32_1 = arith.constant 0 : i32
    return %c0_i32, %c0_i32_0 : i32, i32
  }
  func.func @transform_8(%arg0: i32) -> (i32, i32) {
    %c0_i32 = arith.constant 0 : i32
    %c0_i32_0 = arith.constant 0 : i32
    %c0_i32_1 = arith.constant 0 : i32
    return %c0_i32, %c0_i32_0 : i32, i32
  }
  func.func @transform_9(%arg0: i32) -> (i32, i32) {
    %c0_i32 = arith.constant 0 : i32
    %c0_i32_0 = arith.constant 0 : i32
    %c0_i32_1 = arith.constant 0 : i32
    return %c0_i32, %c0_i32_0 : i32, i32
  }
}

</mosaic_0001>

<bundles_post_ra>
// kernel: tpu_custom_call.1
= control target key start
LH: loop header
LB: loop body
LE: loop exit
PB: predicated region body
PF: predicated region fallthrough
CT: control target
= control target key end

     0   :  { %s4278_s0 = inlined_call_operand.hbm [shape: f32[32,128], index: 0, kind: input, shape index: {}]   ;;  %s4279_s1 = inlined_call_operand.hbm [shape: f32[128,256], index: 1, kind: input, shape index: {}]   ;;  %s4280_s2 = inlined_call_operand.vmem [shape: f32[1,256], index: 2, kind: input, shape index: {}]   ;;  %s4281_s3 = inlined_call_operand.vmem [shape: f32[1,256], index: 3, kind: input, shape index: {}]   ;;  %s4282_s4 = inlined_call_operand.vmem [shape: f32[1,256], index: 4, kind: input, shape index: {}]   ;;  %s4283_s5 = inlined_call_operand.hbm [shape: f32[256,128], index: 5, kind: input, shape index: {}]   ;;  %s4284_s6 = inlined_call_operand.vmem [shape: f32[1,128], index: 6, kind: input, shape index: {}]   ;;  %s4285_s7 = inlined_call_operand.vmem [shape: f32[1,128], index: 7, kind: input, shape index: {}]   ;;  %s4286_s8 = inlined_call_operand.vmem [shape: f32[1,128], index: 8, kind: input, shape index: {}]   ;;  %s4287_s9 = inlined_call_operand.hbm [shape: f32[32,128], index: 9, kind: output, shape index: {}]  }
   0x1   :  { %4312 = sst [smem:[#allocation14_spill]] %s4279_s1 }
   0x2   :  { %14 = vsyncpa [#allocation4], 0 }
   0x3   :  { %15 = vsyncpa [#allocation7], 0 }
   0x4   :  { %17 = vsyncpa [#allocation7 + $0x1], 0 }
   0x5   :  { %18 = vsyncpa [#allocation5], 0  ;;  %s3438_s30 = smov 0   ;;  %s3440_s10 = smov 0  }
   0x6   :  { %s3442_s11 = smov 0   ;;  %s3444_s12 = smov 0  }
   0x7 LB: > { %s3459_s13 = sadd.s32 1, %s3376_s12   ;;  %s52_s14 = sadd.s32 1, %s3372_s11  ;;  %s3376_s12 = sphi %s3444_s12, %s4347_s12   ;;  %s3372_s11 = sphi %s3442_s11, %s4346_s11   ;;  %s3368_s10 = sphi %s3440_s10, %s4345_s10   ;;  %s3364_s30 = sphi %s3438_s30, %s4344_s30  }
   0x8   : > { %s49_s15 = ssub.s32 %s3376_s12, %s3459_s13  ;;  %p59_p0 = scmp.ne.s32.totalorder %s3372_s11, %s3368_s10 }
   0x9   : > { %p50_p1 = scmp.eq.s32.totalorder %s49_s15, 0  ;;  %p60_p2 = scmp.eq.s32.totalorder %s3376_s12, 0 }
   0xa   : > { %p3172_p4 = scmp.lt.s32.totalorder %s3376_s12, 2  ;;  %s299_s17 = sand.u32 1, %s3376_s12  }
   0xb   : > { %s3468_s16 = scalar_select %p50_p1, %s3372_s11, %s52_s14  }
   0xc   : > { %p61_p3 = por %p60_p2, %p59_p0  ;;  %s301_s18 = sand.u32 1, %s3372_s11  }
   0xd   : > { %4313 = sst [smem:[#allocation13_spill]] %s3468_s16  ;;  %s3473_s19 = sshll.u32 %s301_s18, 7 }
   0xe   : > { %s2085_s20 = sshll.u32 %s3376_s12, 7  ;;  %s4314_s1 = sld [smem:[#allocation14_spill]] }
   0xf   : > { %s303_s24 = scalar_lea.vmem [#allocation6], %s3473_s19  ;;  %p3482_p5 = pnand %p3172_p4, %p61_p3 }
  0x10   : > { %s309_s25 = sshll.u32 %s303_s24, 4  ;;  %s3488_s27 = scalar_lea.sflag [#allocation7], %s299_s17  ;;  %s3486_s25 = int_to_ptr.vmem [resolvable:$true] %s309_s25 }
  0x11   : > { %s4315_s26 = scalar_select %p3482_p5, 1, 0 }
  0x12   : > { %p4293_p7 = pneg %p3482_p5 }
  0x14   : > { %s3479_s23 = scalar_lea.hbm %s4314_s1, %s2085_s20  ;;  %s3225_s15 = scalar_lea.hbm %s4314_s1, 4096 }
  0x15   : > { %s3220_s28 = scalar_lea.hbm %s3479_s23, 2048  ;;  %p3226_p10 = scmp.lt.u32.totalorder %s3479_s23, %s4314_s1 }
  0x16   : > { %p3221_p6 = scmp.ne.s32.totalorder %s3479_s23, %s3220_s28  ;;  %p3227_p11 = scmp.lt.u32.totalorder %s3225_s15, %s3220_s28 }
  0x17   : > { %p3229_p13 = scmp.lt.u32.totalorder %s3220_s28, %s3479_s23 }
  0x18   : > { %p3223_p8 = pnand %p4293_p7, %p3221_p6  ;;  %p3228_p12 = por %p3227_p11, %p3226_p10 }
  0x1a   : > { %p3224_p9 = pneg %p3223_p8  ;;  %p3230_p0 = por %p3229_p13, %p3228_p12 }
  0x1c   : > { %p3231_p1 = pnand %p3230_p0, %p3224_p9 }
  0x1e   : > { %3234 = shalt.err (!%p3231_p1)
}
  0x1f   : > { %s3235_s17 = scalar_lea.vmem %s3486_s25, 2048  ;;  %s3378_s21 = smov [#allocation6]  }
  0x20   : > { %p3236_p2 = scmp.ne.s32.totalorder %s3486_s25, %s3235_s17  ;;  %s3240_s22 = sshll.u32 %s3378_s21, 4  ;;  %s3241_s22 = int_to_ptr.vmem [resolvable:$false] %s3240_s22 }
  0x21   : > { %s3242_s24 = scalar_lea.vmem %s3241_s22, 4096  ;;  %p3243_p6 = scmp.lt.s32.totalorder %s3486_s25, %s3241_s22 }
  0x22   : > { %p3238_p3 = pnand %p3236_p2, %p4293_p7  ;;  %p3244_p8 = scmp.lt.s32.totalorder %s3242_s24, %s3235_s17 }
  0x24   : > { %p3239_p4 = pneg %p3238_p3  ;;  %p3245_p10 = por %p3244_p8, %p3243_p6 }
  0x26   : > { %p3246_p11 = pnand %p3245_p10, %p3239_p4 }
  0x28   : > { %3249 = shalt.err (!%p3246_p11)
}
  0x29   : > { %s3379_s28 = smov 256   ;;  %s4288_s29 = smov 128  }
  0x2a   : > { %s4290_s14 = smov 8   ;;  %s3519_s15 = sadd.s32 4294967295, %s3376_s12  }
  0x2b   : > { %3167 = dma.hbm_to_vmem [thread:$0]  (!%p3482_p5), %s3479_s23, 2048, %s3486_s25, %s3488_s27, %s3379_s28, %s4288_s29, %s4290_s14  }
  0x2c   : > { %p65_p9 = scmp.ne.s32.totalorder %s3368_s10, %s3364_s30  ;;  %p4292_p12 = scmp.eq.s32.totalorder %s3519_s15, 0 }
  0x2d   : > { %p2081_p13 = scmp.ge.s32.totalorder %s3376_s12, 1  ;;  %p264_p0 = scmp.lt.s32.totalorder %s3376_s12, 3 }
  0x2e   : > { %p3528_p1 = por %p4292_p12, %p65_p9  ;;  %s3382_s23 = smov [#allocation3]  }
  0x2f   : > { %p3533_p3 = pnand %p2081_p13, %p264_p0  ;;  %s276_s25 = sshll.u32 %s3382_s23, 4  ;;  %s277_s25 = int_to_ptr.vmem [resolvable:$true] %s276_s25 }
  0x30   : > { %s4316_s18 = scalar_select %p3528_p1, 1, 0 }
  0x31   : > { %s4317_s20 = scalar_select %p3533_p3, 1, 0 }
  0x32   : > { %p3160_p4 = pneg %p3533_p3  ;;  %s2105_s17 = sshll.u32 %s3376_s12, 11 }
  0x33   : > { %s341_s30 = scalar_lea.vmem [#allocation8], %s3473_s19  ;;  %s3550_s29 = scalar_lea.hbm %s4283_s5, %s2105_s17 }
  0x34   : > { %s348_s21 = sshll.u32 %s341_s30, 4  ;;  %p3543_p6 = pnand %p3160_p4, %p4292_p12  ;;  %s3552_s21 = int_to_ptr.vmem [resolvable:$true] %s348_s21 }
  0x35   : > { %s3250_s12 = scalar_lea.hbm %s4278_s0, 512 }
  0x36   : > { %p3251_p8 = scmp.ne.s32.totalorder %s4278_s0, %s3250_s12  ;;  %p3252_p10 = pneg %p3543_p6 }
  0x37   : > { %p3257_p13 = scmp.lt.u32.totalorder %s3250_s12, %s4278_s0 }
  0x38   : > { %p3253_p11 = pnand %p3252_p10, %p3251_p8 }
  0x3a   : > { %p3254_p9 = pneg %p3253_p11 }
  0x3c   : > { %p3259_p0 = pnand %p3257_p13, %p3254_p9 }
  0x3e   : > { %3262 = shalt.err (!%p3259_p0)
}
  0x3f   : > { %s3263_s17 = scalar_lea.vmem %s277_s25, 512  ;;  %p3271_p7 = scmp.lt.s32.totalorder %s277_s25, %s277_s25 }
  0x40   : > { %p3264_p4 = scmp.ne.s32.totalorder %s277_s25, %s3263_s17  ;;  %p3272_p1 = scmp.lt.s32.totalorder %s3263_s17, %s3263_s17 }
  0x42   : > { %p3266_p2 = pnand %p3264_p4, %p3252_p10  ;;  %p3273_p3 = por %p3272_p1, %p3271_p7 }
  0x44   : > { %p3267_p12 = pneg %p3266_p2 }
  0x46   : > { %p3274_p5 = pnand %p3273_p3, %p3267_p12 }
  0x48   : > { %3277 = shalt.err (!%p3274_p5)
}
  0x49   : > { %s4319_s14 = smov 8   ;;  %s4320_s24 = smov 128  }
  0x4a   : > { %3163 = dma.hbm_to_vmem [thread:$0]  (!%p3543_p6), %s4278_s0, 512, %s277_s25, [#allocation4], %s4320_s24, %s4320_s24, %s4319_s14  }
  0x4b   : > { %s3278_s1 = scalar_lea.hbm %s3550_s29, 2048  ;;  %p4321_p8 = scmp.ne.s32.totalorder %s4315_s26, 0 }
  0x4c   : > { %p3279_p2 = scmp.ne.s32.totalorder %s3550_s29, %s3278_s1  ;;  %s3283_s12 = scalar_lea.hbm %s4283_s5, 4096 }
  0x4d   : > { %p4322_p7 = pneg %p4321_p8  ;;  %p3284_p1 = scmp.lt.u32.totalorder %s3550_s29, %s4283_s5 }
  0x4e   : > { %p3285_p3 = scmp.lt.u32.totalorder %s3283_s12, %s3278_s1  ;;  %p3287_p11 = scmp.lt.u32.totalorder %s3278_s1, %s3550_s29 }
  0x4f   : > { %p3281_p12 = pnand %p3279_p2, %p4322_p7 }
  0x50   : > { %p3286_p10 = por %p3285_p3, %p3284_p1 }
  0x51   : > { %p3282_p5 = pneg %p3281_p12 }
  0x52   : > { %p3288_p9 = por %p3287_p11, %p3286_p10 }
  0x54   : > { %p3289_p13 = pnand %p3288_p9, %p3282_p5 }
  0x56   : > { %3292 = shalt.err (!%p3289_p13)
}
  0x57   : > { %s3293_s25 = scalar_lea.vmem %s3552_s21, 2048  ;;  %p4323_p0 = pmov %p4322_p7 }
  0x58   : > { %p3294_p6 = scmp.ne.s32.totalorder %s3552_s21, %s3293_s25  ;;  %s3383_s17 = smov [#allocation8]  }
  0x59   : > { %s3298_s28 = sshll.u32 %s3383_s17, 4  ;;  %s3299_s28 = int_to_ptr.vmem [resolvable:$false] %s3298_s28 }
  0x5a   : > { %p3296_p4 = pnand %p3294_p6, %p4323_p0  ;;  %s3300_s23 = scalar_lea.vmem %s3299_s28, 4096 }
  0x5b   : > { %p3301_p7 = scmp.lt.s32.totalorder %s3552_s21, %s3299_s28  ;;  %p3302_p12 = scmp.lt.s32.totalorder %s3300_s23, %s3293_s25 }
  0x5c   : > { %p3297_p2 = pneg %p3296_p4 }
  0x5d   : > { %p3303_p1 = por %p3302_p12, %p3301_p7 }
  0x5f   : > { %p3304_p3 = pnand %p3303_p1, %p3297_p2 }
  0x61   : > { %3307 = shalt.err (!%p3304_p3)
}
  0x62   : > { %3170 = dma.hbm_to_vmem [thread:$0]  (!%p4321_p8), %s3550_s29, 2048, %s3552_s21, %s3488_s27, %s4320_s24, %s4320_s24, %s4319_s14  }
  0x63   : > { %p4324_p5 = scmp.ne.s32.totalorder %s4317_s20, 0 }
  0x64   : > { %p4325_p10 = scmp.eq.s32.totalorder (!%p4324_p5), %s3519_s15, 0 }
  0x65   : > { %360 = sbr.rel (%p4324_p5) target bundleno = 1071 (0x42f), region = 56 }
  0x6c   : > { %3351 = dma.done.wait (%p4325_p10), [#allocation4], 512   ;;  %p4326_p11 = pmov %p4325_p10 }
  0x6d   : > { %s366_s26 = sand.u32 1, %s3519_s15   ;;  %s368_s1 = sand.u32 1, %s3368_s10  }
  0x6e   : > { %3353 = vsyncadd (%p4326_p11), [#allocation4], 4294966784  ;;  %s2091_s16 = sshll.u32 %s368_s1, 7  ;;  %s367_s22 = scalar_lea.sflag [#allocation7], %s366_s26 }
  0x6f   : > { %s3608_s12 = scalar_lea.vmem [#allocation6], %s2091_s16  ;;  %p4327_p9 = scmp.ne.s32.totalorder %s4316_s18, 0 }
  0x71   : > { %3355 = dma.done.wait (%p4327_p9), %s367_s22, 4096  }
  0x72   : > { %3357 = vsyncadd (%p4327_p9), %s367_s22, 4294963200  ;;  %p423_p8 = scmp.lt.s32.totalorder %s3519_s15, 1  ;;  %s3630_s17 = scalar_lea.vmem [#allocation8], %s2091_s16 }
  0x73   : > { %p4328_p13 = scmp.ne.s32.totalorder %s3519_s15, 0 }
  0x74   : > { %s3616_s27 = scalar_select %p423_p8, %s3519_s15, 1 }
  0x75   : > { %436 = sbr.rel (%p4328_p13) target bundleno = 124 (0x7c), region = 72  ;;  %v3384_v0 = vmov (!%p4328_p13), 0.0  }
  0x76   : > { %s425_s21 = scalar_lea.vmem %s4280_s2, %s3616_s27  ;;  %s428_s19 = scalar_lea.vmem %s4281_s3, %s3616_s27  ;;  %437 = vst [vmem:[#allocation2] sm:$0xff] (!%p4328_p13), %v3384_v0  ;;  %438 = vst [vmem:[#allocation2 + $0x8] sm:$0xff] (!%p4328_p13), %v3384_v0 }
  0x77   : > { %s431_s18 = scalar_lea.vmem %s4282_s4, %s3616_s27 }
  0x7c PF: > { %v441_v1 = vld [vmem:[%s3608_s12] sm:$0xff]  ;;  %v442_v2 = vld [vmem:[%s3608_s12 + $0x8] sm:$0xff]  ;;  %v443_v3 = vld [vmem:[%s3608_s12 + $0x10] sm:$0xff]  ;;  %p2097_p6 = scmp.ne.s32.totalorder %s3519_s15, 1 }
  0x7d   : > { %v465_v4 = vand.u32 4294901760, %v441_v1  ;;  %v468_v5 = vand.u32 4294901760, %v442_v2  ;;  %v444_v6 = vld [vmem:[%s3608_s12 + $0x18] sm:$0xff]  ;;  %v471_v7 = vand.u32 4294901760, %v443_v3  ;;  %v445_v8 = vld [vmem:[%s3608_s12 + $0x20] sm:$0xff]  ;;  %v446_v9 = vld [vmem:[%s3608_s12 + $0x28] sm:$0xff] }
  0x7e   : > { %v474_v10 = vand.u32 4294901760, %v444_v6  ;;  %v477_v12 = vand.u32 4294901760, %v445_v8  ;;  %v480_v13 = vand.u32 4294901760, %v446_v9  ;;  %v3645_v15 = vld [vmem:[%s3608_s12 + $0x30] sm:$0xff]  ;;  %v3648_v16 = vld [vmem:[%s3608_s12 + $0x38] sm:$0xff]  ;;  %v449_v22 = vld [vmem:[%s3608_s12 + $0x40] sm:$0xff] }
  0x7f   : > { %v3640_v11 = vpack.c.bf16 %v468_v5, %v465_v4  ;;  %v439_v17 = vld [vmem:[#allocation3 + $0x10] sm:$0xff]  ;;  %v483_v20 = vand.u32 4294901760, %v3645_v15  ;;  %v486_v21 = vand.u32 4294901760, %v3648_v16  ;;  %v450_v23 = vld [vmem:[%s3608_s12 + $0x48] sm:$0xff]  ;;  %v3666_v26 = vsub.f32 %v441_v1, %v465_v4  ;;  %v440_v30 = vld [vmem:[#allocation3 + $0x18] sm:$0xff] }
  0x80   : > { %v3642_v14 = vpack.c.bf16 %v474_v10, %v471_v7  ;;  %v3652_v18 = vand.u32 4294901760, %v439_v17  ;;  %v3655_v19 = vpack.c.bf16 %v480_v13, %v477_v12  ;;  %v489_v28 = vand.u32 4294901760, %v449_v22  ;;  %v451_v31 = vld [vmem:[%s3608_s12 + $0x50] sm:$0xff]  ;;  %v452_v32 = vld [vmem:[%s3608_s12 + $0x58] sm:$0xff]  ;;  %v453_v34 = vld [vmem:[%s3608_s12 + $0x60] sm:$0xff] }
  0x81   : > { %2743 = vmatprep.subr.bf16.mxu0 %v3640_v11  ;;  %v3669_v27 = vpack.c.bf16 %v486_v21, %v483_v20  ;;  %v492_v29 = vand.u32 4294901760, %v450_v23  ;;  %v454_v35 = vld [vmem:[%s3608_s12 + $0x68] sm:$0xff]  ;;  %v455_v36 = vld [vmem:[%s3608_s12 + $0x70] sm:$0xff]  ;;  %v3679_v37 = vsub.f32 %v442_v2, %v468_v5  ;;  %v456_v38 = vld [vmem:[%s3608_s12 + $0x78] sm:$0xff]  ;;  %v568_v40 = vand.u32 4294901760, %v3666_v26 }
  0x82   : > { %2745 = vmatpush3.bf16.msra.mxu0 %v3640_v11  ;;  %v3662_v24 = vsub.f32 %v439_v17, %v3652_v18  ;;  %v3684_v41 = vand.u32 4294901760, %v440_v30  ;;  %v3686_v42 = vsub.f32 %v443_v3, %v471_v7  ;;  %v495_v44 = vand.u32 4294901760, %v451_v31 }
  0x83   : > { %2747 = vmatprep.subr.bf16.mxu0 %v3642_v14  ;;  %v3689_v43 = vpack.c.bf16 %v492_v29, %v489_v28  ;;  %v498_v45 = vand.u32 4294901760, %v452_v32  ;;  %v501_v46 = vand.u32 4294901760, %v453_v34  ;;  %v504_v47 = vand.u32 4294901760, %v454_v35 }
  0x84   : > { %v547_v25 = vand.u32 4294901760, %v3662_v24  ;;  %v507_v48 = vand.u32 4294901760, %v455_v36  ;;  %v510_v49 = vand.u32 4294901760, %v456_v38  ;;  %v575_v50 = vand.u32 4294901760, %v3679_v37 }
  0x85   : > { %v3692_v51 = vsub.f32 %v444_v6, %v474_v10  ;;  %v3694_v52 = vsub.f32 %v445_v8, %v477_v12  ;;  %v569_v53 = vsub.f32 %v3666_v26, %v568_v40  ;;  %v3699_v54 = vsub.f32 %v440_v30, %v3684_v41 }
  0x86   : > { %2749 = vmatpush3.bf16.msra.mxu0 %v3642_v14  ;;  %v548_v33 = vsub.f32 %v3662_v24, %v547_v25  ;;  %v582_v55 = vand.u32 4294901760, %v3686_v42  ;;  %v3702_v56 = vsub.f32 %v446_v9, %v480_v13  ;;  %v3705_v57 = vpack.c.bf16 %v498_v45, %v495_v44 }
  0x87   : > { %2751 = vmatprep.subr.bf16.mxu0 %v3655_v19  ;;  %v3707_v58 = vpack.c.bf16 %v504_v47, %v501_v46  ;;  %v3709_v59 = vpack.c.bf16 %v510_v49, %v507_v48  ;;  %v576_v60 = vsub.f32 %v3679_v37, %v575_v50  ;;  %v589_v61 = vand.u32 4294901760, %v3692_v51 }
  0x88   : > { %v549_v39 = vand.u32 4294901760, %v548_v33  ;;  %v596_v62 = vand.u32 4294901760, %v3694_v52  ;;  %v570_v63 = vand.u32 4294901760, %v569_v53  ;;  %v557_v0 = vand.u32 4294901760, %v3699_v54 }
  0x89   : > { %v583_v1 = vsub.f32 %v3686_v42, %v582_v55  ;;  %v603_v2 = vand.u32 4294901760, %v3702_v56  ;;  %v3720_v3 = vsub.f32 %v3645_v15, %v483_v20  ;;  %v3723_v4 = vsub.f32 %v3648_v16, %v486_v21 }
  0x8a   : > { %2753 = vmatpush3.bf16.msra.mxu0 %v3655_v19  ;;  %2354 = vmatprep.mubr.f32.mxu0 %v549_v39  ;;  %v3725_v5 = vsub.f32 %v449_v22, %v489_v28  ;;  %v3727_v6 = vsub.f32 %v450_v23, %v492_v29  ;;  %v3729_v7 = vsub.f32 %v451_v31, %v495_v44  ;;  %v577_v12 = vand.u32 4294901760, %v576_v60 }
  0x8b   : > { %2755 = vmatprep.subr.bf16.mxu0 %v3669_v27  ;;  %v3731_v8 = vsub.f32 %v452_v32, %v498_v45  ;;  %v3733_v9 = vsub.f32 %v453_v34, %v501_v46  ;;  %v3735_v10 = vsub.f32 %v454_v35, %v504_v47  ;;  %v590_v13 = vsub.f32 %v3692_v51, %v589_v61 }
  0x8c   : > { %v3738_v15 = vsub.f32 %v455_v36, %v507_v48  ;;  %v3740_v17 = vsub.f32 %v456_v38, %v510_v49  ;;  %v558_v16 = vsub.f32 %v3699_v54, %v557_v0  ;;  %v584_v20 = vand.u32 4294901760, %v583_v1 }
  0x8d   : > { %v597_v21 = vsub.f32 %v3694_v52, %v596_v62  ;;  %v604_v22 = vsub.f32 %v3702_v56, %v603_v2  ;;  %v610_v23 = vand.u32 4294901760, %v3720_v3  ;;  %v617_v28 = vand.u32 4294901760, %v3723_v4 }
  0x8e   : > { %2757 = vmatpush3.bf16.msra.mxu0 %v3669_v27  ;;  %v624_v29 = vand.u32 4294901760, %v3725_v5  ;;  %v631_v30 = vand.u32 4294901760, %v3727_v6  ;;  %v638_v31 = vand.u32 4294901760, %v3729_v7  ;;  %v645_v32 = vand.u32 4294901760, %v3731_v8 }
  0x8f   : > { %2759 = vmatprep.subr.bf16.mxu0 %v3689_v43  ;;  %v652_v33 = vand.u32 4294901760, %v3733_v9  ;;  %v659_v34 = vand.u32 4294901760, %v3735_v10  ;;  %v666_v35 = vand.u32 4294901760, %v3738_v15  ;;  %v673_v36 = vand.u32 4294901760, %v3740_v17 }
  0x90   : > { %v3759_v38 = vpack.c.bf16 %v575_v50, %v568_v40  ;;  %v3761_v39 = vpack.c.bf16 %v589_v61, %v582_v55  ;;  %v2774_v44 = vpack.c.bf16 %v577_v12, %v570_v63  ;;  %v3764_v45 = vpack.c.bf16 %v603_v2, %v596_v62 }
  0x91   : > { %v3766_v46 = vpack.c.bf16 %v617_v28, %v610_v23  ;;  %v3768_v47 = vpack.c.bf16 %v631_v30, %v624_v29  ;;  %v591_v48 = vand.u32 4294901760, %v590_v13  ;;  %v3771_v49 = vpack.c.bf16 %v645_v32, %v638_v31 }
  0x92   : > { %2761 = vmatpush3.bf16.msra.mxu0 %v3689_v43  ;;  %v3773_v53 = vpack.c.bf16 %v659_v34, %v652_v33  ;;  %v3775_v40 = vpack.c.bf16 %v673_v36, %v666_v35  ;;  %v559_v50 = vand.u32 4294901760, %v558_v16  ;;  %v598_v55 = vand.u32 4294901760, %v597_v21 }
  0x93   : > { %2763 = vmatprep.subr.bf16.mxu0 %v3705_v57  ;;  %v605_v60 = vand.u32 4294901760, %v604_v22  ;;  %v2778_v61 = vpack.c.bf16 %v591_v48, %v584_v20  ;;  %v611_v62 = vsub.f32 %v3720_v3, %v610_v23  ;;  %v618_v63 = vsub.f32 %v3723_v4, %v617_v28 }
  0x94   : > { %v625_v13 = vsub.f32 %v3725_v5, %v624_v29  ;;  %v632_v16 = vsub.f32 %v3727_v6, %v631_v30  ;;  %v639_v21 = vsub.f32 %v3729_v7, %v638_v31  ;;  %v646_v28 = vsub.f32 %v3731_v8, %v645_v32 }
  0x95   : > { %v2782_v1 = vpack.c.bf16 %v605_v60, %v598_v55  ;;  %v612_v2 = vand.u32 4294901760, %v611_v62  ;;  %v619_v12 = vand.u32 4294901760, %v618_v63  ;;  %v660_v29 = vsub.f32 %v3735_v10, %v659_v34 }
  0x96   : > { %2765 = vmatpush3.bf16.msra.mxu0 %v3705_v57  ;;  %v626_v22 = vand.u32 4294901760, %v625_v13  ;;  %v633_v23 = vand.u32 4294901760, %v632_v16  ;;  %v647_v55 = vand.u32 4294901760, %v646_v28  ;;  %v674_v62 = vsub.f32 %v3740_v17, %v673_v36 }
  0x97   : > { %2767 = vmatprep.subr.bf16.mxu0 %v3707_v58  ;;  %v2786_v20 = vpack.c.bf16 %v619_v12, %v612_v2  ;;  %v661_v31 = vand.u32 4294901760, %v660_v29  ;;  %v2806_v34 = vpack.c.bf16 %v3679_v37, %v3666_v26  ;;  %v2814_v36 = vpack.c.bf16 %v3702_v56, %v3694_v52  ;;  %v1200_v56 = vld [vmem:[%s3630_s17 + $0x28] sm:$0xff]  ;;  %v3920_v12 = vld [vmem:[%s3630_s17 + $0x78] sm:$0xff] }
  0x98   : > { %v2790_v48 = vpack.c.bf16 %v633_v23, %v626_v22  ;;  %v2818_v2 = vpack.c.bf16 %v3723_v4, %v3720_v3  ;;  %v2822_v26 = vpack.c.bf16 %v3727_v6, %v3725_v5  ;;  %v2826_v37 = vpack.c.bf16 %v3731_v8, %v3729_v7  ;;  %v1202_v3 = vld [vmem:[%s3630_s17 + $0x38] sm:$0xff]  ;;  %v3887_v7 = vld [vmem:[%s3630_s17 + $0x40] sm:$0xff]  ;;  %v3890_v8 = vld [vmem:[%s3630_s17 + $0x48] sm:$0xff] }
  0x99   : > { %v1233_v5 = vand.u32 4294901760, %v1202_v3 }
  0x9a   : > { %2769 = vmatpush3.bf16.msra.mxu0 %v3707_v58 }
  0x9b   : > { %2771 = vmatprep.subr.bf16.mxu0 %v3709_v59 }
  0x9e   : > { %2773 = vmatpush3.bf16.msra.mxu0 %v3709_v59 }
  0x9f   : > { %2775 = vmatprep.subr.bf16.mxu0 %v2774_v44 }
  0xa1   : > { %2355 = vmatmul.mubr.f32.vlgmr.msra.gmra.mrb[0].mxu0 %v559_v50  ;;  %v640_v50 = vand.u32 4294901760, %v639_v21  ;;  %v1257_v21 = vand.u32 4294901760, %v3920_v12 }
  0xa2   : > { %2777 = vmatpush3.bf16.msra.mxu0 %v2774_v44  ;;  %2389 = vmatprep.mubr.f32.mxu0 %v3652_v18  ;;  %v653_v44 = vsub.f32 %v3733_v9, %v652_v33  ;;  %v675_v33 = vand.u32 4294901760, %v674_v62 }
  0xa3   : > { %2779 = vmatprep.subr.bf16.mxu0 %v2778_v61  ;;  %v2794_v60 = vpack.c.bf16 %v647_v55, %v640_v50 }
  0xa4   : > { %v654_v30 = vand.u32 4294901760, %v653_v44 }
  0xa6   : > { %2781 = vmatpush3.bf16.msra.mxu0 %v2778_v61  ;;  %v667_v61 = vsub.f32 %v3738_v15, %v666_v35  ;;  %v2798_v32 = vpack.c.bf16 %v661_v31, %v654_v30  ;;  %v2810_v35 = vpack.c.bf16 %v3692_v51, %v3686_v42  ;;  %v2830_v42 = vpack.c.bf16 %v3735_v10, %v3733_v9 }
  0xa7   : > { %2783 = vmatprep.subr.bf16.mxu0 %v2782_v1  ;;  %v2834_v51 = vpack.c.bf16 %v3740_v17, %v3738_v15  ;;  %v1236_v9 = vand.u32 4294901760, %v3887_v7  ;;  %v1239_v10 = vand.u32 4294901760, %v3890_v8  ;;  %v3899_v17 = vld [vmem:[%s3630_s17 + $0x50] sm:$0xff] }
  0xa8   : > { %v668_v63 = vand.u32 4294901760, %v667_v61 }
  0xa9   : > { %v3896_v15 = vpack.c.bf16 %v1239_v10, %v1236_v9 }
  0xaa   : > { %2785 = vmatpush3.bf16.msra.mxu0 %v2782_v1  ;;  %v2802_v1 = vpack.c.bf16 %v675_v33, %v668_v63 }
  0xab   : > { %2787 = vmatprep.subr.bf16.mxu0 %v2786_v20 }
  0xae   : > { %2789 = vmatpush3.bf16.msra.mxu0 %v2786_v20 }
  0xaf   : > { %2791 = vmatprep.subr.bf16.mxu0 %v2790_v48 }
  0xb2   : > { %2793 = vmatpush3.bf16.msra.mxu0 %v2790_v48 }
  0xb3   : > { %2795 = vmatprep.subr.bf16.mxu0 %v2794_v60 }
  0xb6   : > { %2797 = vmatpush3.bf16.msra.mxu0 %v2794_v60 }
  0xb7   : > { %2799 = vmatprep.subr.bf16.mxu0 %v2798_v32 }
  0xba   : > { %2801 = vmatpush3.bf16.msra.mxu0 %v2798_v32 }
  0xbb   : > { %2803 = vmatprep.subr.bf16.mxu0 %v2802_v1 }
  0xbe   : > { %2805 = vmatpush3.bf16.msra.mxu0 %v2802_v1 }
  0xbf   : > { %2807 = vmatprep.subr.bf16.mxu0 %v2806_v34 }
  0xc1   : > { %2390 = vmatmul.mubr.f32.vlgmr.msra.gmra.mrb[0].mxu0 %v3684_v41 }
  0xc2   : > { %2809 = vmatpush3.bf16.msra.mxu0 %v2806_v34  ;;  %2424 = vmatprep.mubr.f32.mxu0 %v3662_v24 }
  0xc3   : > { %2811 = vmatprep.subr.bf16.mxu0 %v2810_v35 }
  0xc6   : > { %2813 = vmatpush3.bf16.msra.mxu0 %v2810_v35 }
  0xc7   : > { %2815 = vmatprep.subr.bf16.mxu0 %v2814_v36 }
  0xca   : > { %2817 = vmatpush3.bf16.msra.mxu0 %v2814_v36 }
  0xcb   : > { %2819 = vmatprep.subr.bf16.mxu0 %v2818_v2 }
  0xce   : > { %2821 = vmatpush3.bf16.msra.mxu0 %v2818_v2 }
  0xcf   : > { %2823 = vmatprep.subr.bf16.mxu0 %v2822_v26 }
  0xd2   : > { %2825 = vmatpush3.bf16.msra.mxu0 %v2822_v26 }
  0xd3   : > { %2827 = vmatprep.subr.bf16.mxu0 %v2826_v37 }
  0xd6   : > { %2829 = vmatpush3.bf16.msra.mxu0 %v2826_v37 }
  0xd7   : > { %2831 = vmatprep.subr.bf16.mxu0 %v2830_v42 }
  0xda   : > { %2833 = vmatpush3.bf16.msra.mxu0 %v2830_v42 }
  0xdb   : > { %2835 = vmatprep.subr.bf16.mxu0 %v2834_v51 }
  0xde   : > { %2837 = vmatpush3.bf16.msra.mxu0 %v2834_v51 }
  0xdf   : > { %2839 = vmatprep.subr.bf16.mxu0 %v3640_v11 }
  0xe1   : > { %2425 = vmatmul.mubr.f32.vlgmr.msra.gmra.mrb[0].mxu0 %v3699_v54 }
  0xe2   : > { %2841 = vmatpush3.bf16.msra.mxu0 %v3640_v11  ;;  %2459 = vmatprep.mubr.f32.mxu0 %v547_v25  ;;  %v1197_v25 = vld [vmem:[%s3630_s17 + $0x10] sm:$0xff] }
  0xe3   : > { %2843 = vmatprep.subr.bf16.mxu0 %v3642_v14 }
  0xe6   : > { %2845 = vmatpush3.bf16.msra.mxu0 %v3642_v14 }
  0xe7   : > { %2847 = vmatprep.subr.bf16.mxu0 %v3655_v19 }
  0xea   : > { %2849 = vmatpush3.bf16.msra.mxu0 %v3655_v19 }
  0xeb   : > { %2851 = vmatprep.subr.bf16.mxu0 %v3669_v27 }
  0xee   : > { %2853 = vmatpush3.bf16.msra.mxu0 %v3669_v27 }
  0xef   : > { %2855 = vmatprep.subr.bf16.mxu0 %v3689_v43 }
  0xf2   : > { %2857 = vmatpush3.bf16.msra.mxu0 %v3689_v43 }
  0xf3   : > { %2859 = vmatprep.subr.bf16.mxu0 %v3705_v57 }
  0xf6   : > { %2861 = vmatpush3.bf16.msra.mxu0 %v3705_v57 }
  0xf7   : > { %2863 = vmatprep.subr.bf16.mxu0 %v3707_v58 }
  0xfa   : > { %2865 = vmatpush3.bf16.msra.mxu0 %v3707_v58 }
  0xfb   : > { %2867 = vmatprep.subr.bf16.mxu0 %v3709_v59 }
  0xfe   : > { %2869 = vmatpush3.bf16.msra.mxu0 %v3709_v59 }
  0xff   : > { %2871 = vmatprep.subr.bf16.mxu0 %v3759_v38 }
 0x101   : > { %2460 = vmatmul.mubr.f32.vlgmr.msra.gmra.mrb[0].mxu0 %v557_v0  ;;  %v1201_v0 = vld [vmem:[%s3630_s17 + $0x30] sm:$0xff] }
 0x102   : > { %2873 = vmatpush3.bf16.msra.mxu0 %v3759_v38  ;;  %2494 = vmatprep.mubr.f32.mxu0 %v3652_v18  ;;  %v1230_v4 = vand.u32 4294901760, %v1201_v0  ;;  %v3902_v38 = vld [vmem:[%s3630_s17 + $0x58] sm:$0xff] }
 0x103   : > { %2875 = vmatprep.subr.bf16.mxu0 %v3761_v39 }
 0x104   : > { %v3884_v6 = vpack.c.bf16 %v1233_v5, %v1230_v4 }
 0x106   : > { %2877 = vmatpush3.bf16.msra.mxu0 %v3761_v39  ;;  %v1242_v39 = vand.u32 4294901760, %v3899_v17 }
 0x107   : > { %2879 = vmatprep.subr.bf16.mxu0 %v3764_v45 }
 0x10a   : > { %2881 = vmatpush3.bf16.msra.mxu0 %v3764_v45  ;;  %v1245_v45 = vand.u32 4294901760, %v3902_v38 }
 0x10b   : > { %2883 = vmatprep.subr.bf16.mxu0 %v3766_v46 }
 0x10c   : > { %v3922_v13 = vpack.c.bf16 %v1245_v45, %v1242_v39 }
 0x10e   : > { %2885 = vmatpush3.bf16.msra.mxu0 %v3766_v46  ;;  %v3908_v46 = vld [vmem:[%s3630_s17 + $0x60] sm:$0xff] }
 0x10f   : > { %2887 = vmatprep.subr.bf16.mxu0 %v3768_v47 }
 0x112   : > { %2889 = vmatpush3.bf16.msra.mxu0 %v3768_v47  ;;  %v3911_v47 = vld [vmem:[%s3630_s17 + $0x68] sm:$0xff] }
 0x113   : > { %2891 = vmatprep.subr.bf16.mxu0 %v3771_v49 }
 0x116   : > { %2893 = vmatpush3.bf16.msra.mxu0 %v3771_v49  ;;  %v3914_v49 = vld [vmem:[%s3630_s17 + $0x70] sm:$0xff] }
 0x117   : > { %2895 = vmatprep.subr.bf16.mxu0 %v3773_v53  ;;  %v1254_v16 = vand.u32 4294901760, %v3914_v49 }
 0x119   : > { %v3939_v22 = vpack.c.bf16 %v1257_v21, %v1254_v16 }
 0x11a   : > { %2897 = vmatpush3.bf16.msra.mxu0 %v3773_v53  ;;  %v1248_v53 = vand.u32 4294901760, %v3908_v46 }
 0x11b   : > { %2899 = vmatprep.subr.bf16.mxu0 %v3775_v40 }
 0x11e   : > { %2901 = vmatpush3.bf16.msra.mxu0 %v3775_v40  ;;  %v1251_v40 = vand.u32 4294901760, %v3911_v47 }
 0x11f   : > { %2903 = vmatprep.subr.bf16.mxu0 %v3640_v11 }
 0x120   : > { %v3930_v20 = vpack.c.bf16 %v1251_v40, %v1248_v53 }
 0x121   : > { %2495 = vmatmul.mubr.f32.vlgmr.msra.gmra.mrb[0].mxu0 %v3684_v41 }
 0x122   : > { %2905 = vmatpush3.bf16.msra.mxu0 %v3640_v11  ;;  %2529 = vmatprep.mubr.f32.mxu0 %v3652_v18  ;;  %v1195_v11 = vld [vmem:[%s3630_s17] sm:$0xff] }
 0x123   : > { %2907 = vmatprep.subr.bf16.mxu0 %v3642_v14  ;;  %v1212_v18 = vand.u32 4294901760, %v1195_v11 }
 0x125   : > { %v3941_v23 = vsub.f32 %v1195_v11, %v1212_v18  ;;  %v3985_v11 = vsub.f32 %v1201_v0, %v1230_v4 }
 0x126   : > { %2909 = vmatpush3.bf16.msra.mxu0 %v3642_v14  ;;  %v1196_v14 = vld [vmem:[%s3630_s17 + $0x8] sm:$0xff] }
 0x127   : > { %2911 = vmatprep.subr.bf16.mxu0 %v3655_v19  ;;  %v1315_v44 = vand.u32 4294901760, %v3941_v23 }
 0x129   : > { %v1316_v50 = vsub.f32 %v3941_v23, %v1315_v44 }
 0x12a   : > { %2913 = vmatpush3.bf16.msra.mxu0 %v3655_v19  ;;  %v1215_v19 = vand.u32 4294901760, %v1196_v14 }
 0x12b   : > { %2915 = vmatprep.subr.bf16.mxu0 %v3669_v27  ;;  %v1317_v60 = vand.u32 4294901760, %v1316_v50 }
 0x12c   : > { %v3866_v24 = vpack.c.bf16 %v1215_v19, %v1212_v18  ;;  %v3943_v28 = vsub.f32 %v1196_v14, %v1215_v19  ;;  %v3987_v14 = vsub.f32 %v1202_v3, %v1233_v5 }
 0x12e   : > { %2917 = vmatpush3.bf16.msra.mxu0 %v3669_v27  ;;  %v1198_v27 = vld [vmem:[%s3630_s17 + $0x18] sm:$0xff]  ;;  %2935 = vmatprep.subr.bf16.mxu1 %v3866_v24  ;;  %v1322_v48 = vand.u32 4294901760, %v3943_v28 }
 0x12f   : > { %2919 = vmatprep.subr.bf16.mxu0 %v3689_v43  ;;  %v1221_v52 = vand.u32 4294901760, %v1198_v27  ;;  %2937 = vmatpush3.bf16.msra.mxu1 %v3866_v24 }
 0x130   : > { %v1323_v55 = vsub.f32 %v3943_v28, %v1322_v48 }
 0x131   : > { %v3957_v30 = vsub.f32 %v1198_v27, %v1221_v52  ;;  %v4306_v27 = vand.u32 4294901760, %v3987_v14 }
 0x132   : > { %2921 = vmatpush3.bf16.msra.mxu0 %v3689_v43  ;;  %v1218_v43 = vand.u32 4294901760, %v1197_v25  ;;  %v1324_v31 = vand.u32 4294901760, %v1323_v55 }
 0x133   : > { %2923 = vmatprep.subr.bf16.mxu0 %v3705_v57  ;;  %v4310_v62 = vand.u32 4294901760, %v3957_v30 }
 0x134   : > { %v3872_v54 = vpack.c.bf16 %v1221_v52, %v1218_v43  ;;  %v3955_v29 = vsub.f32 %v1197_v25, %v1218_v43  ;;  %v3962_v32 = vpack.c.bf16 %v1324_v31, %v1317_v60  ;;  %v4307_v25 = vand.u32 4294901760, %v3985_v11 }
 0x135   : > { %v1337_v33 = vsub.f32 %v3957_v30, %v4310_v62 }
 0x136   : > { %2925 = vmatpush3.bf16.msra.mxu0 %v3705_v57  ;;  %2939 = vmatprep.subr.bf16.mxu1 %v3872_v54  ;;  %v4311_v61 = vand.u32 4294901760, %v3955_v29  ;;  %v1358_v52 = vsub.f32 %v3985_v11, %v4307_v25 }
 0x137   : > { %2927 = vmatprep.subr.bf16.mxu0 %v3707_v58  ;;  %2941 = vmatpush3.bf16.msra.mxu1 %v3872_v54  ;;  %v1338_v36 = vand.u32 4294901760, %v1337_v33 }
 0x138   : > { %v1330_v63 = vsub.f32 %v3955_v29, %v4311_v61 }
 0x13a   : > { %2929 = vmatpush3.bf16.msra.mxu0 %v3707_v58  ;;  %v1227_v58 = vand.u32 4294901760, %v1200_v56  ;;  %v1331_v35 = vand.u32 4294901760, %v1330_v63 }
 0x13b   : > { %2931 = vmatprep.subr.bf16.mxu0 %v3709_v59 }
 0x13c   : > { %v3972_v34 = vsub.f32 %v1200_v56, %v1227_v58  ;;  %v3977_v37 = vpack.c.bf16 %v1338_v36, %v1331_v35  ;;  %v4000_v56 = vsub.f32 %v3890_v8, %v1239_v10  ;;  %v4014_v8 = vsub.f32 %v3899_v17, %v1242_v39 }
 0x13d   : > { %v4039_v39 = vsub.f32 %v3911_v47, %v1251_v40  ;;  %v4056_v47 = vsub.f32 %v3920_v12, %v1257_v21 }
 0x13e   : > { %2933 = vmatpush3.bf16.msra.mxu0 %v3709_v59  ;;  %v4308_v26 = vand.u32 4294901760, %v3972_v34  ;;  %v4304_v3 = vand.u32 4294901760, %v4000_v56  ;;  %v4303_v60 = vand.u32 4294901760, %v4014_v8 }
 0x140   : > { %v1351_v51 = vsub.f32 %v3972_v34, %v4308_v26  ;;  %v1386_v33 = vsub.f32 %v4014_v8, %v4303_v60 }
 0x141   : > { %2530 = vmatmul.mubr.f32.vlgmr.msra.gmra.mrb[0].mxu0 %v3684_v41  ;;  %v1199_v41 = vld [vmem:[%s3630_s17 + $0x20] sm:$0xff] }
 0x142   : > { %v1224_v57 = vand.u32 4294901760, %v1199_v41  ;;  %v1352_v19 = vand.u32 4294901760, %v1351_v51 }
 0x144   : > { %v3878_v59 = vpack.c.bf16 %v1227_v58, %v1224_v57  ;;  %v3970_v1 = vsub.f32 %v1199_v41, %v1224_v57  ;;  %v3997_v41 = vsub.f32 %v3887_v7, %v1236_v9  ;;  %v1365_v57 = vsub.f32 %v3987_v14, %v4306_v27 }
 0x145   : > { %v1359_v58 = vand.u32 4294901760, %v1358_v52  ;;  %v1379_v7 = vsub.f32 %v4000_v56, %v4304_v3  ;;  %v4017_v9 = vsub.f32 %v3902_v38, %v1245_v45  ;;  %v4034_v38 = vsub.f32 %v3908_v46, %v1248_v53 }
 0x146   : > { %2943 = vmatprep.subr.bf16.mxu1 %v3878_v59  ;;  %v4309_v2 = vand.u32 4294901760, %v3970_v1  ;;  %v4305_v0 = vand.u32 4294901760, %v3997_v41  ;;  %v1366_v4 = vand.u32 4294901760, %v1365_v57  ;;  %v1387_v45 = vand.u32 4294901760, %v1386_v33 }
 0x147   : > { %2945 = vmatpush3.bf16.msra.mxu1 %v3878_v59  ;;  %v1380_v55 = vand.u32 4294901760, %v1379_v7  ;;  %v4302_v31 = vand.u32 4294901760, %v4017_v9  ;;  %v4301_v36 = vand.u32 4294901760, %v4034_v38  ;;  %v4051_v46 = vsub.f32 %v3914_v49, %v1254_v16 }
 0x148   : > { %2947 = vmatprep.subr.bf16.mxu1 %v3884_v6  ;;  %v1344_v42 = vsub.f32 %v3970_v1, %v4309_v2  ;;  %v1372_v5 = vsub.f32 %v3997_v41, %v4305_v0  ;;  %v4019_v10 = vpack.c.bf16 %v1366_v4, %v1359_v58  ;;  %v4298_v52 = vand.u32 4294901760, %v4056_v47 }
 0x149   : > { %v1393_v17 = vsub.f32 %v4017_v9, %v4302_v31  ;;  %v4079_v7 = vpack.c.bf16 %v3957_v30, %v3955_v29  ;;  %v4091_v33 = vpack.c.bf16 %v4000_v56, %v3997_v41 }
 0x14a   : > { %v1345_v18 = vand.u32 4294901760, %v1344_v42  ;;  %v1373_v50 = vand.u32 4294901760, %v1372_v5  ;;  %v4300_v42 = vand.u32 4294901760, %v4039_v39  ;;  %v1421_v12 = vsub.f32 %v4056_v47, %v4298_v52 }
 0x14b   : > { %2949 = vmatpush3.bf16.msra.mxu1 %v3884_v6  ;;  %v1394_v35 = vand.u32 4294901760, %v1393_v17  ;;  %v4075_v5 = vpack.c.bf16 %v3943_v28, %v3941_v23  ;;  %v4095_v17 = vpack.c.bf16 %v4017_v9, %v4014_v8  ;;  %v4332_v23 = vand.u32 4294901760, %v3972_v34 }
 0x14c   : > { %2951 = vmatprep.subr.bf16.mxu1 %v3896_v15  ;;  %v3991_v43 = vpack.c.bf16 %v1352_v19, %v1345_v18  ;;  %v4023_v63 = vpack.c.bf16 %v1380_v55, %v1373_v50  ;;  %v1400_v18 = vsub.f32 %v4034_v38, %v4301_v36  ;;  %v1407_v53 = vsub.f32 %v4039_v39, %v4300_v42 }
 0x14d   : > { %v4043_v51 = vpack.c.bf16 %v1394_v35, %v1387_v45  ;;  %v4299_v19 = vand.u32 4294901760, %v4051_v46  ;;  %v1422_v58 = vand.u32 4294901760, %v1421_v12  ;;  %v4083_v50 = vpack.c.bf16 %v3972_v34, %v3970_v1  ;;  %v2094_v35 = vld [vmem:[%s425_s21] ss:$0 sm:$0xff] }
 0x14e   : > { %v1401_v40 = vand.u32 4294901760, %v1400_v18  ;;  %v1408_v57 = vand.u32 4294901760, %v1407_v53  ;;  %v4087_v55 = vpack.c.bf16 %v3987_v14, %v3985_v11  ;;  %v4099_v45 = vpack.c.bf16 %v4039_v39, %v4034_v38 }
 0x14f   : > { %2953 = vmatpush3.bf16.msra.mxu1 %v3896_v15  ;;  %v1414_v49 = vsub.f32 %v4051_v46, %v4299_v19  ;;  %v4333_v28 = vand.u32 4294901760, %v3985_v11  ;;  %v4338_v34 = vand.u32 4294901760, %v4017_v9  ;;  %v4339_v11 = vand.u32 4294901760, %v4034_v38  ;;  %v1957_v9 = vld [vmem:[#allocation3 + $0x8] sm:$0xff] (!%p2097_p6) }
 0x150   : > { %2955 = vmatprep.subr.bf16.mxu1 %v3922_v13  ;;  %v4069_v16 = vpack.c.bf16 %v1408_v57, %v1401_v40  ;;  %v4108_v57 = vpack.c.bf16 %v4056_v47, %v4051_v46  ;;  %1959 = vst [vmem:[#allocation9 + $0x8] sm:$0xff] (!%p2097_p6), %v1957_v9 }
 0x151   : > { %v1415_v21 = vand.u32 4294901760, %v1414_v49 }
 0x153   : > { %2957 = vmatpush3.bf16.msra.mxu1 %v3922_v13  ;;  %v4071_v4 = vpack.c.bf16 %v1422_v58, %v1415_v21 }
 0x154   : > { %2959 = vmatprep.subr.bf16.mxu1 %v3930_v20 }
 0x157   : > { %2961 = vmatpush3.bf16.msra.mxu1 %v3930_v20 }
 0x158   : > { %2963 = vmatprep.subr.bf16.mxu1 %v3939_v22 }
 0x15b   : > { %2965 = vmatpush3.bf16.msra.mxu1 %v3939_v22 }
 0x15c   : > { %2967 = vmatprep.subr.bf16.mxu1 %v3962_v32 }
 0x214   : > { %v2531_v18 = vpop.f32.mrb[0].mxu0 }
 0x215   : > { %v3126_v53 = vadd.f32 %v2531_v18, %v2094_v35  ;;  %v1138_v40 = vpop.f32.mrb[1].mxu0 }
 0x216   : > { %v3127_v49 = vadd.f32 %v2094_v35, %v1138_v40 }
 0x218   : > { %v1148_v12 = vadd.f32 %v3127_v49, %v3126_v53 }
 0x21a   : > { %v1149_v21 = vrot.slane %v1148_v12, 4 }
 0x21c   : > { %v1150_v58 = vadd.f32 %v1149_v21, %v1148_v12 }
 0x21e   : > { %v1151_v52 = vrot.slane %v1150_v58, 2 }
 0x220   : > { %v1152_v19 = vadd.f32 %v1151_v52, %v1150_v58 }
 0x222   : > { %v1153_v42 = vrot.slane %v1152_v19, 1 }
 0x224   : > { %v1154_v36 = vadd.f32 %v1153_v42, %v1152_v19 }
 0x226   : > { %v1156_v31 = vmul.f32 0.0625, %v1154_v36  ;;  %v2095_v36 = vld [vmem:[%s428_s19] ss:$0 sm:$0xff] }
 0x228   : > { %v1157_v60 = vsub.f32 %v3127_v49, %v1156_v31  ;;  %v1158_v3 = vsub.f32 %v3126_v53, %v1156_v31 }
 0x22a   : > { %v1159_v0 = vmul.f32 %v1157_v60, %v1157_v60  ;;  %v1160_v18 = vmul.f32 %v1158_v3, %v1158_v3 }
 0x22c   : > { %v1161_v27 = vadd.f32 %v1160_v18, %v1159_v0 }
 0x22e   : > { %v1162_v25 = vrot.slane %v1161_v27, 4 }
 0x230   : > { %v1163_v26 = vadd.f32 %v1162_v25, %v1161_v27  ;;  %v2096_v25 = vld [vmem:[%s431_s18] ss:$0 sm:$0xff] }
 0x232   : > { %v1164_v2 = vrot.slane %v1163_v26, 2 }
 0x234   : > { %v1165_v62 = vadd.f32 %v1164_v2, %v1163_v26 }
 0x236   : > { %v1166_v35 = vrot.slane %v1165_v62, 1 }
 0x238   : > { %v1167_v40 = vadd.f32 %v1166_v35, %v1165_v62 }
 0x23a   : > { %v1168_v61 = vmul.f32 0.0625, %v1167_v40 }
 0x23c   : > { %v1169_v12 = vadd.f32 1e-05, %v1168_v61 }
 0x23e   : > { %3216 = vrsqrt.f32 %v1169_v12 }
 0x248   : > { %v3217_v52 = vpop.eup %3216 }
 0x249   : > { %v1171_v31 = vmul.f32 %v3217_v52, %v1157_v60  ;;  %v1172_v42 = vmul.f32 %v3217_v52, %v1158_v3 }
 0x24b   : > { %v1180_v27 = vmul.f32 %v2095_v36, %v1171_v31  ;;  %v1181_v2 = vmul.f32 %v2095_v36, %v1172_v42 }
 0x24d   : > { %v1189_v26 = vadd.f32 %v2096_v25, %v1180_v27  ;;  %v1190_v62 = vadd.f32 %v2096_v25, %v1181_v2 }
 0x24f   : > { %v1191_v0 = vmax.f32 %v1189_v26, 0.0  ;;  %v1192_v61 = vmax.f32 %v1190_v62, 0.0 }
 0x251   : > { %v4120_v19 = vand.u32 4294901760, %v1191_v0  ;;  %v4122_v53 = vand.u32 4294901760, %v1192_v61 }
 0x253   : > { %v1293_v49 = vsub.f32 %v1191_v0, %v4120_v19  ;;  %v4126_v60 = vsub.f32 %v1192_v61, %v4122_v53 }
 0x255   : > { %v1294_v3 = vand.u32 4294901760, %v1293_v49  ;;  %v1304_v21 = vand.u32 4294901760, %v4126_v60 }
 0x257   : > { %v1295_v58 = vsub.f32 %v1293_v49, %v1294_v3  ;;  %v1305_v18 = vsub.f32 %v4126_v60, %v1304_v21 }
 0x259   : > { %v1296_v35 = vand.u32 4294901760, %v1295_v58  ;;  %v1306_v40 = vand.u32 4294901760, %v1305_v18  ;;  %v2100_v58 = vld [vmem:[%s4286_s8] ss:$0 sm:$0xff] (!%p2097_p6) }
 0x25b   : > { %2564 = vmatprep.mubr.f32.mxu1 %v1296_v35 }
 0x25c   : > { %2565 = vmatmul.mubr.f32.vlgmr.msra.gmra.mrb[0].mxu1 %v1306_v40 }
 0x25d   : > { %2969 = vmatpush3.bf16.msra.mxu1 %v3962_v32  ;;  %2599 = vmatprep.mubr.f32.mxu1 %v4120_v19  ;;  %v3062_v32 = vpack.c.bf16 %v1322_v48, %v1315_v44  ;;  %v4334_v44 = vand.u32 4294901760, %v3987_v14  ;;  %v4340_v14 = vand.u32 4294901760, %v4039_v39 }
 0x25e   : > { %2971 = vmatprep.subr.bf16.mxu1 %v3977_v37 }
 0x25f   : > { %v3074_v48 = vpack.c.bf16 %v4334_v44, %v4333_v28 }
 0x261   : > { %2973 = vmatpush3.bf16.msra.mxu1 %v3977_v37  ;;  %v4329_v37 = vand.u32 4294901760, %v3955_v29  ;;  %v4335_v29 = vand.u32 4294901760, %v3997_v41  ;;  %v4341_v41 = vand.u32 4294901760, %v4051_v46 }
 0x262   : > { %2975 = vmatprep.subr.bf16.mxu1 %v3991_v43 }
 0x265   : > { %2977 = vmatpush3.bf16.msra.mxu1 %v3991_v43  ;;  %v4330_v43 = vand.u32 4294901760, %v3957_v30  ;;  %v4336_v30 = vand.u32 4294901760, %v4000_v56  ;;  %v4342_v56 = vand.u32 4294901760, %v4056_v47 }
 0x266   : > { %2979 = vmatprep.subr.bf16.mxu1 %v4019_v10 }
 0x269   : > { %2981 = vmatpush3.bf16.msra.mxu1 %v4019_v10  ;;  %v3066_v10 = vpack.c.bf16 %v4330_v43, %v4329_v37 }
 0x26a   : > { %2983 = vmatprep.subr.bf16.mxu1 %v4023_v63 }
 0x26d   : > { %2985 = vmatpush3.bf16.msra.mxu1 %v4023_v63  ;;  %v4331_v63 = vand.u32 4294901760, %v3970_v1  ;;  %v4337_v1 = vand.u32 4294901760, %v4014_v8 }
 0x26e   : > { %2987 = vmatprep.subr.bf16.mxu1 %v4043_v51 }
 0x271   : > { %2989 = vmatpush3.bf16.msra.mxu1 %v4043_v51  ;;  %v3070_v51 = vpack.c.bf16 %v4332_v23, %v4331_v63 }
 0x272   : > { %2991 = vmatprep.subr.bf16.mxu1 %v4069_v16 }
 0x275   : > { %2993 = vmatpush3.bf16.msra.mxu1 %v4069_v16  ;;  %v3078_v16 = vpack.c.bf16 %v4336_v30, %v4335_v29 }
 0x276   : > { %2995 = vmatprep.subr.bf16.mxu1 %v4071_v4 }
 0x279   : > { %2997 = vmatpush3.bf16.msra.mxu1 %v4071_v4  ;;  %v3082_v4 = vpack.c.bf16 %v4338_v34, %v4337_v1 }
 0x27a   : > { %2999 = vmatprep.subr.bf16.mxu1 %v4075_v5 }
 0x27c   : > { %2600 = vmatmul.mubr.f32.vlgmr.msra.gmra.mrb[0].mxu1 %v4122_v53 }
 0x27d   : > { %3001 = vmatpush3.bf16.msra.mxu1 %v4075_v5  ;;  %2634 = vmatprep.mubr.f32.mxu1 %v1293_v49  ;;  %v3086_v5 = vpack.c.bf16 %v4340_v14, %v4339_v11 }
 0x27e   : > { %3003 = vmatprep.subr.bf16.mxu1 %v4079_v7 }
 0x281   : > { %3005 = vmatpush3.bf16.msra.mxu1 %v4079_v7  ;;  %v3090_v7 = vpack.c.bf16 %v4342_v56, %v4341_v41 }
 0x282   : > { %3007 = vmatprep.subr.bf16.mxu1 %v4083_v50 }
 0x285   : > { %3009 = vmatpush3.bf16.msra.mxu1 %v4083_v50 }
 0x286   : > { %3011 = vmatprep.subr.bf16.mxu1 %v4087_v55 }
 0x289   : > { %3013 = vmatpush3.bf16.msra.mxu1 %v4087_v55 }
 0x28a   : > { %3015 = vmatprep.subr.bf16.mxu1 %v4091_v33 }
 0x28d   : > { %3017 = vmatpush3.bf16.msra.mxu1 %v4091_v33 }
 0x28e   : > { %3019 = vmatprep.subr.bf16.mxu1 %v4095_v17 }
 0x291   : > { %3021 = vmatpush3.bf16.msra.mxu1 %v4095_v17 }
 0x292   : > { %3023 = vmatprep.subr.bf16.mxu1 %v4099_v45 }
 0x295   : > { %3025 = vmatpush3.bf16.msra.mxu1 %v4099_v45 }
 0x296   : > { %3027 = vmatprep.subr.bf16.mxu1 %v4108_v57 }
 0x299   : > { %3029 = vmatpush3.bf16.msra.mxu1 %v4108_v57 }
 0x29a   : > { %3031 = vmatprep.subr.bf16.mxu1 %v3866_v24 }
 0x29c   : > { %2635 = vmatmul.mubr.f32.vlgmr.msra.gmra.mrb[0].mxu1 %v4126_v60  ;;  %v2099_v60 = vld [vmem:[%s4285_s7] ss:$0 sm:$0xff] (!%p2097_p6) }
 0x29d   : > { %3033 = vmatpush3.bf16.msra.mxu1 %v3866_v24  ;;  %2669 = vmatprep.mubr.f32.mxu1 %v1294_v3 }
 0x29e   : > { %3035 = vmatprep.subr.bf16.mxu1 %v3872_v54 }
 0x2a1   : > { %3037 = vmatpush3.bf16.msra.mxu1 %v3872_v54 }
 0x2a2   : > { %3039 = vmatprep.subr.bf16.mxu1 %v3878_v59 }
 0x2a5   : > { %3041 = vmatpush3.bf16.msra.mxu1 %v3878_v59 }
 0x2a6   : > { %3043 = vmatprep.subr.bf16.mxu1 %v3884_v6 }
 0x2a9   : > { %3045 = vmatpush3.bf16.msra.mxu1 %v3884_v6 }
 0x2aa   : > { %3047 = vmatprep.subr.bf16.mxu1 %v3896_v15 }
 0x2ad   : > { %3049 = vmatpush3.bf16.msra.mxu1 %v3896_v15 }
 0x2ae   : > { %3051 = vmatprep.subr.bf16.mxu1 %v3922_v13 }
 0x2b1   : > { %3053 = vmatpush3.bf16.msra.mxu1 %v3922_v13 }
 0x2b2   : > { %3055 = vmatprep.subr.bf16.mxu1 %v3930_v20 }
 0x2b5   : > { %3057 = vmatpush3.bf16.msra.mxu1 %v3930_v20 }
 0x2b6   : > { %3059 = vmatprep.subr.bf16.mxu1 %v3939_v22 }
 0x2b9   : > { %3061 = vmatpush3.bf16.msra.mxu1 %v3939_v22 }
 0x2ba   : > { %3063 = vmatprep.subr.bf16.mxu1 %v3062_v32 }
 0x2bc   : > { %2670 = vmatmul.mubr.f32.vlgmr.msra.gmra.mrb[0].mxu1 %v1304_v21 }
 0x2bd   : > { %3065 = vmatpush3.bf16.msra.mxu1 %v3062_v32  ;;  %2704 = vmatprep.mubr.f32.mxu1 %v4120_v19 }
 0x2be   : > { %3067 = vmatprep.subr.bf16.mxu1 %v3066_v10 }
 0x2c1   : > { %3069 = vmatpush3.bf16.msra.mxu1 %v3066_v10 }
 0x2c2   : > { %3071 = vmatprep.subr.bf16.mxu1 %v3070_v51 }
 0x2c5   : > { %3073 = vmatpush3.bf16.msra.mxu1 %v3070_v51 }
 0x2c6   : > { %3075 = vmatprep.subr.bf16.mxu1 %v3074_v48 }
 0x2c9   : > { %3077 = vmatpush3.bf16.msra.mxu1 %v3074_v48 }
 0x2ca   : > { %3079 = vmatprep.subr.bf16.mxu1 %v3078_v16 }
 0x2cd   : > { %3081 = vmatpush3.bf16.msra.mxu1 %v3078_v16 }
 0x2ce   : > { %3083 = vmatprep.subr.bf16.mxu1 %v3082_v4 }
 0x2d1   : > { %3085 = vmatpush3.bf16.msra.mxu1 %v3082_v4 }
 0x2d2   : > { %3087 = vmatprep.subr.bf16.mxu1 %v3086_v5 }
 0x2d5   : > { %3089 = vmatpush3.bf16.msra.mxu1 %v3086_v5 }
 0x2d6   : > { %3091 = vmatprep.subr.bf16.mxu1 %v3090_v7 }
 0x2d9   : > { %3093 = vmatpush3.bf16.msra.mxu1 %v3090_v7 }
 0x2da   : > { %3095 = vmatprep.subr.bf16.mxu1 %v3866_v24 }
 0x2dc   : > { %2705 = vmatmul.mubr.f32.vlgmr.msra.gmra.mrb[0].mxu1 %v4122_v53 }
 0x2dd   : > { %3097 = vmatpush3.bf16.msra.mxu1 %v3866_v24  ;;  %2739 = vmatprep.mubr.f32.mxu1 %v4120_v19  ;;  %v1194_v24 = vld [vmem:[#allocation2 + $0x8] sm:$0xff] }
 0x2de   : > { %3099 = vmatprep.subr.bf16.mxu1 %v3872_v54 }
 0x2e1   : > { %3101 = vmatpush3.bf16.msra.mxu1 %v3872_v54  ;;  %v1193_v54 = vld [vmem:[#allocation2] sm:$0xff] }
 0x2e2   : > { %3103 = vmatprep.subr.bf16.mxu1 %v3878_v59 }
 0x2e5   : > { %3105 = vmatpush3.bf16.msra.mxu1 %v3878_v59 }
 0x2e6   : > { %3107 = vmatprep.subr.bf16.mxu1 %v3884_v6 }
 0x2e9   : > { %3109 = vmatpush3.bf16.msra.mxu1 %v3884_v6 }
 0x2ea   : > { %3111 = vmatprep.subr.bf16.mxu1 %v3896_v15 }
 0x2ed   : > { %3113 = vmatpush3.bf16.msra.mxu1 %v3896_v15 }
 0x2ee   : > { %3115 = vmatprep.subr.bf16.mxu1 %v3922_v13 }
 0x2f1   : > { %3117 = vmatpush3.bf16.msra.mxu1 %v3922_v13  ;;  %v1956_v13 = vld [vmem:[#allocation3] sm:$0xff] (!%p2097_p6) }
 0x2f2   : > { %3119 = vmatprep.subr.bf16.mxu1 %v3930_v20  ;;  %1958 = vst [vmem:[#allocation9] sm:$0xff] (!%p2097_p6), %v1956_v13 }
 0x2f5   : > { %3121 = vmatpush3.bf16.msra.mxu1 %v3930_v20 }
 0x2f6   : > { %3123 = vmatprep.subr.bf16.mxu1 %v3939_v22 }
 0x2f9   : > { %3125 = vmatpush3.bf16.msra.mxu1 %v3939_v22  ;;  %v2098_v22 = vld [vmem:[%s4284_s6] ss:$0 sm:$0xff] (!%p2097_p6) }
 0x2fc   : > { %2740 = vmatmul.mubr.f32.vlgmr.msra.gmra.mrb[0].mxu1 %v4122_v53 }
 0x3cd   : > { %1902 = sbr.rel (%p2097_p6) target bundleno = 1045 (0x415), region = 76 }
 0x3cf   : > { %v2741_v59 = vpop.f32.mrb[0].mxu1 }
 0x3d0   : > { %v1896_v6 = vadd.f32 %v2741_v59, %v1194_v24  ;;  %v1885_v8 = vpop.f32.mrb[1].mxu1 }
 0x3d1   : > { %v1895_v15 = vadd.f32 %v1885_v8, %v1193_v54 }
 0x3d2   : > { %1898 = vst [vmem:[#allocation2 + $0x8] sm:$0xff] %v1896_v6 }
 0x3d3   : > { %1897 = vst [vmem:[#allocation2] sm:$0xff] %v1895_v15 }
 0x3d9   : > { %v1904_v38 = vld [vmem:[#allocation2 + $0x8] sm:$0xff] }
 0x3da   : > { %v1903_v20 = vld [vmem:[#allocation2] sm:$0xff]  ;;  %v1913_v46 = vadd.f32 %v2098_v22, %v1904_v38 }
 0x3db   : > { %v1912_v39 = vadd.f32 %v2098_v22, %v1903_v20 }
 0x3dd   : > { %v1914_v47 = vadd.f32 %v1913_v46, %v1912_v39 }
 0x3df   : > { %v1915_v50 = vrot.slane %v1914_v47, 4 }
 0x3e1   : > { %v1916_v55 = vadd.f32 %v1915_v50, %v1914_v47 }
 0x3e3   : > { %v1917_v33 = vrot.slane %v1916_v55, 2 }
 0x3e5   : > { %v1918_v17 = vadd.f32 %v1917_v33, %v1916_v55 }
 0x3e7   : > { %v1919_v45 = vrot.slane %v1918_v17, 1 }
 0x3e9   : > { %v1920_v57 = vadd.f32 %v1919_v45, %v1918_v17 }
 0x3eb   : > { %v1921_v12 = vmul.f32 0.0625, %v1920_v57 }
 0x3ed   : > { %v1922_v52 = vsub.f32 %v1912_v39, %v1921_v12  ;;  %v1923_v36 = vsub.f32 %v1913_v46, %v1921_v12 }
 0x3ef   : > { %v1924_v31 = vmul.f32 %v1922_v52, %v1922_v52  ;;  %v1925_v42 = vmul.f32 %v1923_v36, %v1923_v36 }
 0x3f1   : > { %v1926_v25 = vadd.f32 %v1925_v42, %v1924_v31 }
 0x3f3   : > { %v1927_v27 = vrot.slane %v1926_v25, 4 }
 0x3f5   : > { %v1928_v2 = vadd.f32 %v1927_v27, %v1926_v25 }
 0x3f7   : > { %v1929_v26 = vrot.slane %v1928_v2, 2 }
 0x3f9   : > { %v1930_v62 = vadd.f32 %v1929_v26, %v1928_v2 }
 0x3fb   : > { %v1931_v0 = vrot.slane %v1930_v62, 1 }
 0x3fd   : > { %v1932_v61 = vadd.f32 %v1931_v0, %v1930_v62 }
 0x3ff   : > { %v1933_v19 = vmul.f32 0.0625, %v1932_v61 }
 0x401   : > { %v1934_v53 = vadd.f32 1e-05, %v1933_v19 }
 0x403   : > { %3218 = vrsqrt.f32 %v1934_v53 }
 0x40d   : > { %v3219_v49 = vpop.eup %3218 }
 0x40e   : > { %v1936_v3 = vmul.f32 %v3219_v49, %v1922_v52  ;;  %v1937_v21 = vmul.f32 %v3219_v49, %v1923_v36 }
 0x410   : > { %v1945_v18 = vmul.f32 %v2099_v60, %v1936_v3  ;;  %v1946_v35 = vmul.f32 %v2099_v60, %v1937_v21 }
 0x412   : > { %v1954_v40 = vadd.f32 %v2100_v58, %v1945_v18  ;;  %v1955_v32 = vadd.f32 %v2100_v58, %v1946_v35 }
 0x414   : > { %1960 = vst [vmem:[#allocation9 + $0x10] sm:$0xff] %v1954_v40  ;;  %1961 = vst [vmem:[#allocation9 + $0x18] sm:$0xff] %v1955_v32 }
 0x415 PF: > { %p3174_p0 = scmp.eq.s32.totalorder %s3519_s15, 1  ;;  %s3385_s24 = smov [#allocation9]  }
 0x416   : > { %s1968_s19 = sshll.u32 %s3385_s24, 4  ;;  %s1969_s19 = int_to_ptr.vmem [resolvable:$true] %s1968_s19 }
 0x417   : > { %s3308_s30 = scalar_lea.vmem %s1969_s19, 512  ;;  %p3315_p12 = scmp.lt.s32.totalorder %s1969_s19, %s1969_s19 }
 0x418   : > { %p3309_p4 = scmp.ne.s32.totalorder %s1969_s19, %s3308_s30  ;;  %p3316_p1 = scmp.lt.s32.totalorder %s3308_s30, %s3308_s30 }
 0x41a   : > { %p3310_p2 = pnand %p3309_p4, %p3174_p0  ;;  %p3317_p3 = por %p3316_p1, %p3315_p12 }
 0x41c   : > { %p3311_p7 = pneg %p3310_p2 }
 0x41e   : > { %p3318_p5 = pnand %p3317_p3, %p3311_p7 }
 0x420   : > { %3321 = shalt.err (!%p3318_p5)
}
 0x421   : > { %s3322_s17 = scalar_lea.hbm %s4287_s9, 512 }
 0x422   : > { %p3323_p10 = scmp.ne.s32.totalorder %s4287_s9, %s3322_s17  ;;  %p3328_p8 = scmp.lt.u32.totalorder %s3322_s17, %s4287_s9 }
 0x424   : > { %p3324_p11 = pnand %p3323_p10, %p3174_p0 }
 0x426   : > { %p3325_p9 = pneg %p3324_p11 }
 0x428   : > { %p3330_p13 = pnand %p3328_p8, %p3325_p9 }
 0x42a   : > { %3333 = shalt.err (!%p3330_p13)
}
 0x42b   : > { %s3386_s16 = smov 128   ;;  %s3387_s22 = smov 8  }
 0x42c   : > { %3157 = dma.vmem_to_hbm [thread:$0]  (%p3174_p0), %s1969_s19, 512, %s4287_s9, [#allocation5], %s3386_s16, %s3386_s16, %s3387_s22  }
 0x42d   : > { %3359 = dma.done.wait (%p3174_p0), [#allocation5], 512  }
 0x42e   : > { %3361 = vsyncadd (%p3174_p0), [#allocation5], 4294966784 }
 0x42f PF: > { %s4343_s29 = sld [smem:[#allocation13_spill]]  ;;  %p21_p6 = scmp.ge.s32.totalorder %s3459_s13, 4  }
 0x430   : > { %s4344_s30 = smov %s3368_s10  ;;  %s4345_s10 = smov %s3372_s11 }
 0x431   : > { %s4347_s12 = smov %s3459_s13  ;;  %23 = sbr.rel (!%p21_p6) target bundleno = 7 (0x7), region = 126 }
 0x435   : > { %s4346_s11 = smov %s4343_s29 }
 0x438   :  { %1984 = vsyncpa [#allocation4], 1 }
 0x439   :  { %1986 = vsyncpa [#allocation4 + $0x1], 1 }
 0x43a   :  { %1987 = vsyncpa [#allocation7], 1 }
 0x43b   :  { %1989 = vsyncpa [#allocation7 + $0x1], 1 }
 0x43c   :  { %1990 = vsyncpa [#allocation5], 1 }
 0x43d   :  { %1992 = vsyncpa [#allocation5 + $0x1], 1 }

</bundles_post_ra>
